<compile_context>
chip_gen: v5e
topology: v5e:2x2
jax: 0.10.0
libtpu: 0.0.40
codegen_flags: <defaults>
</compile_context>

<pallas_src>
import jax
import jax.numpy as jnp
from jax.experimental import pallas as pl
from jax.experimental.pallas import tpu as pltpu

LANE = 128      # TPU lane width (last dim of a vreg)
SUBLANE = 8     # TPU sublane count (second-to-last dim of a f32 vreg)


def _round_up(v, m):
    return (v + m - 1) // m * m


# ---------------------------------------------------------------------------
# Fused Pallas kernel: L x (GCNConv + ReLU)  then  mean-pool + Linear epilogue
# ---------------------------------------------------------------------------
def fused_generator_kernel(a_ref, x0_ref, w_ref, b_ref, p_ref, wo_ref, bo_ref,
                           o_ref, x_scr):
    layer = pl.program_id(0)
    n_layers = pl.num_programs(0)

    # Load the input node features into the resident scratch on the first step.
    @pl.when(layer == 0)
    def _():
        x_scr[...] = x0_ref[...]

    # GCN layer:  h = relu(A_hat @ x @ W + b)    (associativity: (A@x)@W)
    x = x_scr[...]                                                    # bf16 [N, C]
    ax = jnp.dot(a_ref[...], x, preferred_element_type=jnp.float32)   # MXU, f32 acc
    h = jnp.dot(ax.astype(jnp.bfloat16), w_ref[...],
                preferred_element_type=jnp.float32)                   # MXU, f32 acc
    h = jnp.maximum(h + b_ref[...], 0.0)                              # VPU, f32
    x_scr[...] = h.astype(jnp.bfloat16)                               # cast on store

    # Epilogue on the last layer: global mean pool + final Linear.
    @pl.when(layer == n_layers - 1)
    def _():
        pooled = jnp.dot(p_ref[...], x_scr[...],
                         preferred_element_type=jnp.float32)          # [G, C] f32
        out = jnp.dot(pooled.astype(jnp.bfloat16), wo_ref[...],
                      preferred_element_type=jnp.float32) + bo_ref[...]
        o_ref[...] = out


def generator_forward_fused(packed, x_pad, a_pad, pool_pad):
    """packed: stacked, lane-padded params; x_pad [Np, C]; pool_pad [Gp, Np]."""
    n = x_pad.shape[0]
    c = packed["w_stack"].shape[1]
    n_layers = packed["w_stack"].shape[0]
    gp = pool_pad.shape[0]
    op = packed["w_out_t"].shape[1]

    # bf16 MXU operands (f32 accumulation inside the kernel); biases stay f32.
    a_bf = a_pad.astype(jnp.bfloat16)
    x_bf = x_pad.astype(jnp.bfloat16)
    p_bf = pool_pad.astype(jnp.bfloat16)
    w_bf = packed["w_stack"].astype(jnp.bfloat16)
    wo_bf = packed["w_out_t"].astype(jnp.bfloat16)
    b_f32 = packed["b_stack"]
    bo_f32 = packed["b_out"]

    flops = (n_layers * (2 * n * n * c + 2 * n * c * c)
             + 2 * gp * n * c + 2 * gp * c * op)
    bytes_accessed = (
        2 * (a_bf.size + x_bf.size + w_bf.size + p_bf.size + wo_bf.size)
        + 4 * (b_f32.size + bo_f32.size)
        + 4 * gp * op
    )

    grid_spec = pltpu.PrefetchScalarGridSpec(
        num_scalar_prefetch=0,
        grid=(n_layers,),
        in_specs=[
            pl.BlockSpec((n, n), lambda l: (0, 0)),           # A_hat, VMEM-resident
            pl.BlockSpec((n, c), lambda l: (0, 0)),           # x0,    VMEM-resident
            pl.BlockSpec((None, c, c), lambda l: (l, 0, 0)),  # per-layer W (streamed)
            pl.BlockSpec((None, 1, c), lambda l: (l, 0, 0)),  # per-layer b (streamed)
            pl.BlockSpec((gp, n), lambda l: (0, 0)),          # pool matrix, resident
            pl.BlockSpec((c, op), lambda l: (0, 0)),          # W_out^T, resident
            pl.BlockSpec((1, op), lambda l: (0, 0)),          # b_out, resident
        ],
        out_specs=pl.BlockSpec((gp, op), lambda l: (0, 0)),   # written on last step
        scratch_shapes=[pltpu.VMEM((n, c), jnp.bfloat16)],    # node features, resident
    )

    return pl.pallas_call(
        fused_generator_kernel,
        out_shape=jax.ShapeDtypeStruct((gp, op), jnp.float32),
        grid_spec=grid_spec,
        compiler_params=pltpu.CompilerParams(
            dimension_semantics=("arbitrary",),   # layer axis is a serial carry
        ),
        cost_estimate=pl.CostEstimate(
            flops=flops, transcendentals=0, bytes_accessed=bytes_accessed),
    )(a_bf, x_bf, w_bf, b_f32, p_bf, wo_bf, bo_f32)


# ---------------------------------------------------------------------------
# Glue: normalized adjacency, mean-pool matrix, params (+ padding / packing)
# ---------------------------------------------------------------------------
def build_norm_adj(edge_index, num_nodes):
    """Dense D^{-1/2}(A+I)D^{-1/2}, the PyG GCNConv normalization."""
    # TODO(synk): .at[].set dedups repeated edges; PyG gcn_norm would sum them.
    src, dst = edge_index[0], edge_index[1]
    a = jnp.zeros((num_nodes, num_nodes), jnp.float32)
    a = a.at[dst, src].set(1.0)                      # message j -> i lands in row i
    a = a + jnp.eye(num_nodes, dtype=jnp.float32)    # self loops
    deg = jnp.sum(a, axis=1)
    d_inv_sqrt = 1.0 / jnp.sqrt(deg)
    return d_inv_sqrt[:, None] * a * d_inv_sqrt[None, :]


def build_mean_pool(batch, num_graphs):
    """Dense [G, N] matrix with 1/|V_g| entries -> global_mean_pool."""
    onehot = (batch[None, :] == jnp.arange(num_graphs)[:, None]).astype(jnp.float32)
    counts = jnp.sum(onehot, axis=1, keepdims=True)
    return onehot / jnp.maximum(counts, 1.0)


def init_generator_params(key, in_channels, num_layers, hidden_channels, out_channels):
    params = {"gcn_w": [], "gcn_b": []}
    dims = [in_channels] + [hidden_channels] * num_layers
    for li in range(num_layers):
        key, kw = jax.random.split(key)
        fan_in = dims[li]
        w = jax.random.normal(kw, (dims[li], dims[li + 1]), jnp.float32) / jnp.sqrt(fan_in)
        params["gcn_w"].append(w)
        params["gcn_b"].append(jnp.zeros((dims[li + 1],), jnp.float32))
    key, kw, kb = jax.random.split(key, 3)
    # torch Linear stores [out, hidden]; we keep the transposed [hidden, out].
    params["out_w_t"] = jax.random.normal(
        kw, (hidden_channels, out_channels), jnp.float32) / jnp.sqrt(hidden_channels)
    params["out_b"] = jax.random.normal(kb, (out_channels,), jnp.float32) * 0.01
    return params


def pack_params(params, hidden_channels, out_channels, c_pad=LANE, o_pad=LANE):
    """Zero-pad feature dims to the 128-lane width and stack per-layer weights."""
    n_layers = len(params["gcn_w"])
    w_stack = jnp.zeros((n_layers, c_pad, c_pad), jnp.float32)
    b_stack = jnp.zeros((n_layers, 1, c_pad), jnp.float32)
    for li, (w, b) in enumerate(zip(params["gcn_w"], params["gcn_b"])):
        w_stack = w_stack.at[li, : w.shape[0], : w.shape[1]].set(w)
        b_stack = b_stack.at[li, 0, : b.shape[0]].set(b)
    w_out_t = jnp.zeros((c_pad, o_pad), jnp.float32)
    w_out_t = w_out_t.at[:hidden_channels, :out_channels].set(params["out_w_t"])
    b_out = jnp.zeros((1, o_pad), jnp.float32).at[0, :out_channels].set(params["out_b"])
    return {"w_stack": w_stack, "b_stack": b_stack, "w_out_t": w_out_t, "b_out": b_out}


def generator_forward_ref(params, x, a_hat, pool_mat):
    """Pure-JAX f32 reference of the module forward (for correctness check)."""
    h = x
    for w, b in zip(params["gcn_w"], params["gcn_b"]):
        h = jnp.maximum(a_hat @ (h @ w) + b, 0.0)
    return (pool_mat @ h) @ params["out_w_t"] + params["out_b"]


# ---------------------------------------------------------------------------
if __name__ == "__main__":
    key = jax.random.PRNGKey(0)

    # Small, forward-consistent shapes: 2 graphs x 8 nodes, 8 input features,
    # 3 GCN layers with hidden=32, output dim 4.
    nodes_per_graph = 8
    num_graphs = 2
    N = nodes_per_graph * num_graphs
    in_channels = 8
    num_layers = 3
    hidden_channels = 32
    out_channels = 4

    # Node features (data.x)
    key, kx = jax.random.split(key)
    x = jax.random.normal(kx, (N, in_channels), jnp.float32)

    # edge_index: undirected ring within each graph (both directions)
    srcs, dsts = [], []
    for g in range(num_graphs):
        base = g * nodes_per_graph
        for i in range(nodes_per_graph):
            j = (i + 1) % nodes_per_graph
            srcs += [base + i, base + j]
            dsts += [base + j, base + i]
    edge_index = jnp.array([srcs, dsts], dtype=jnp.int32)

    # data.batch: node -> graph assignment
    batch = jnp.repeat(jnp.arange(num_graphs, dtype=jnp.int32), nodes_per_graph)

    a_hat = build_norm_adj(edge_index, N)
    pool_mat = build_mean_pool(batch, num_graphs)

    key, kp = jax.random.split(key)
    params = init_generator_params(kp, in_channels, num_layers,
                                   hidden_channels, out_channels)
    packed = pack_params(params, hidden_channels, out_channels)

    # Padding for the fused kernel. Zero padding does not perturb results:
    #  - padded W rows/cols, biases, pool rows and pool columns are zero;
    #  - padded node rows of A_hat are zero, and padded node *columns* of
    #    A_hat / pool are zero, so any values in padded x rows never reach
    #    real rows or the pooled output.
    C_pad = LANE
    N_pad = _round_up(N, SUBLANE)
    G_pad = _round_up(num_graphs, SUBLANE)
    x_pad = jnp.zeros((N_pad, C_pad), jnp.float32).at[:N, :in_channels].set(x)
    a_pad = jnp.zeros((N_pad, N_pad), jnp.float32).at[:N, :N].set(a_hat)
    pool_pad = jnp.zeros((G_pad, N_pad), jnp.float32).at[:num_graphs, :N].set(pool_mat)

    out_pad = generator_forward_fused(packed, x_pad, a_pad, pool_pad)
    out_pad = jax.block_until_ready(out_pad)
    out = out_pad[:num_graphs, :out_channels]

    ref = generator_forward_ref(params, x, a_hat, pool_mat)

    assert out.shape == (num_graphs, out_channels), out.shape
    assert jnp.all(jnp.isfinite(out))
    # bf16 MXU operands with f32 accumulation -> loose tolerance vs f32 ref.
    assert jnp.allclose(out, ref, atol=1e-1, rtol=1e-1), (out, ref)
    print("KERNEL_OK")
</pallas_src>

<mosaic_0001>
module attributes {stable_mosaic.version = 11 : i64} {
  func.func @fused_generator_kernel(%arg0: i32, %arg1: memref<16x16xbf16, #tpu.memory_space<vmem>>, %arg2: memref<16x128xbf16, #tpu.memory_space<vmem>>, %arg3: memref<1x128x128xbf16, #tpu.memory_space<vmem>>, %arg4: memref<1x1x128xf32, #tpu.memory_space<vmem>>, %arg5: memref<8x16xbf16, #tpu.memory_space<vmem>>, %arg6: memref<128x128xbf16, #tpu.memory_space<vmem>>, %arg7: memref<1x128xf32, #tpu.memory_space<vmem>>, %arg8: memref<8x128xf32, #tpu.memory_space<vmem>>, %arg9: memref<16x128xbf16, #tpu.memory_space<vmem>>) attributes {dimension_semantics = [#tpu.dimension_semantics<arbitrary>], iteration_bounds = array<i64: 3>, scalar_prefetch = 0 : i64, scratch_operands = 1 : i64, tpu.core_type = #tpu.core_type<tc>, window_params = [{pipeline_mode = #tpu.pipeline_mode<synchronous>, transform_indices = @transform_0, window_bounds = array<i64: 16, 16>}, {pipeline_mode = #tpu.pipeline_mode<synchronous>, transform_indices = @transform_1, window_bounds = array<i64: 16, 128>}, {transform_indices = @transform_2, window_bounds = array<i64: 1, 128, 128>}, {transform_indices = @transform_3, window_bounds = array<i64: 1, 1, 128>}, {pipeline_mode = #tpu.pipeline_mode<synchronous>, transform_indices = @transform_4, window_bounds = array<i64: 8, 16>}, {pipeline_mode = #tpu.pipeline_mode<synchronous>, transform_indices = @transform_5, window_bounds = array<i64: 128, 128>}, {pipeline_mode = #tpu.pipeline_mode<synchronous>, transform_indices = @transform_6, window_bounds = array<i64: 1, 128>}, {pipeline_mode = #tpu.pipeline_mode<synchronous>, transform_indices = @transform_7, window_bounds = array<i64: 8, 128>}]} {
    %c0_i32 = arith.constant 0 : i32
    %0 = arith.cmpi eq, %arg0, %c0_i32 : i32
    %1 = arith.extui %0 : i1 to i32
    %c0_i32_0 = arith.constant 0 : i32
    %2 = arith.cmpi ne, %1, %c0_i32_0 : i32
    scf.if %2 {
      %c0_15 = arith.constant 0 : index
      %c0_16 = arith.constant 0 : index
      %21 = vector.load %arg2[%c0_15, %c0_16] : memref<16x128xbf16, #tpu.memory_space<vmem>>, vector<16x128xbf16>
      %c0_17 = arith.constant 0 : index
      %c0_18 = arith.constant 0 : index
      %22 = vector.load %arg9[%c0_17, %c0_18] : memref<16x128xbf16, #tpu.memory_space<vmem>>, vector<16x128xbf16>
      tpu.vector_store %arg9[%c0_17, %c0_18], %21 {strides = array<i32>} : memref<16x128xbf16, #tpu.memory_space<vmem>>, vector<16x128xbf16>,
    } else {
    }
    %c0 = arith.constant 0 : index
    %c0_1 = arith.constant 0 : index
    %3 = vector.load %arg9[%c0, %c0_1] : memref<16x128xbf16, #tpu.memory_space<vmem>>, vector<16x128xbf16>
    %c0_2 = arith.constant 0 : index
    %c0_3 = arith.constant 0 : index
    %4 = vector.load %arg1[%c0_2, %c0_3] : memref<16x16xbf16, #tpu.memory_space<vmem>>, vector<16x16xbf16>
    %cst = arith.constant dense<0.000000e+00> : vector<16x128xf32>
    %5 = tpu.matmul %4, %3, %cst {dimension_numbers = #tpu.dot_dimension_numbers<[1], [0], [0], [1], [0, 0, 1, 1], [], []>} : vector<16x16xbf16>, vector<16x128xbf16>, vector<16x128xf32> -> vector<16x128xf32>
    %6 = arith.truncf %5 : vector<16x128xf32> to vector<16x128xbf16>
    %c0_4 = arith.constant 0 : index
    %c0_5 = arith.constant 0 : index
    %c0_6 = arith.constant 0 : index
    %7 = vector.load %arg3[%c0_4, %c0_5, %c0_6] : memref<1x128x128xbf16, #tpu.memory_space<vmem>>, vector<1x128x128xbf16>
    %8 = vector.shape_cast %7 : vector<1x128x128xbf16> to vector<128x128xbf16>
    %cst_7 = arith.constant dense<0.000000e+00> : vector<16x128xf32>
    %9 = tpu.matmul %6, %8, %cst_7 {dimension_numbers = #tpu.dot_dimension_numbers<[1], [0], [0], [1], [0, 0, 1, 1], [], []>} : vector<16x128xbf16>, vector<128x128xbf16>, vector<16x128xf32> -> vector<16x128xf32>
    %c0_8 = arith.constant 0 : index
    %c0_9 = arith.constant 0 : index
    %c0_10 = arith.constant 0 : index
    %10 = vector.load %arg4[%c0_8, %c0_9, %c0_10] : memref<1x1x128xf32, #tpu.memory_space<vmem>>, vector<1x1x128xf32>
    %11 = vector.shape_cast %10 : vector<1x1x128xf32> to vector<1x128xf32>
    %12 = vector.broadcast %11 : vector<1x128xf32> to vector<16x128xf32>
    %13 = arith.addf %9, %12 : vector<16x128xf32>
    %cst_11 = arith.constant 0.000000e+00 : f32
    %14 = vector.broadcast %cst_11 : f32 to vector<16x128xf32>
    %15 = arith.maximumf %13, %14 : vector<16x128xf32>
    %16 = arith.truncf %15 : vector<16x128xf32> to vector<16x128xbf16>
    %c0_12 = arith.constant 0 : index
    %c0_13 = arith.constant 0 : index
    %17 = vector.load %arg9[%c0_12, %c0_13] : memref<16x128xbf16, #tpu.memory_space<vmem>>, vector<16x128xbf16>
    tpu.vector_store %arg9[%c0_12, %c0_13], %16 {strides = array<i32>} : memref<16x128xbf16, #tpu.memory_space<vmem>>, vector<16x128xbf16>,
    %c2_i32 = arith.constant 2 : i32
    %18 = arith.cmpi eq, %arg0, %c2_i32 : i32
    %19 = arith.extui %18 : i1 to i32
    %c0_i32_14 = arith.constant 0 : i32
    %20 = arith.cmpi ne, %19, %c0_i32_14 : i32
    scf.if %20 {
      %c0_15 = arith.constant 0 : index
      %c0_16 = arith.constant 0 : index
      %21 = vector.load %arg5[%c0_15, %c0_16] : memref<8x16xbf16, #tpu.memory_space<vmem>>, vector<8x16xbf16>
      %c0_17 = arith.constant 0 : index
      %c0_18 = arith.constant 0 : index
      %22 = vector.load %arg9[%c0_17, %c0_18] : memref<16x128xbf16, #tpu.memory_space<vmem>>, vector<16x128xbf16>
      %cst_19 = arith.constant dense<0.000000e+00> : vector<8x128xf32>
      %23 = tpu.matmul %21, %22, %cst_19 {dimension_numbers = #tpu.dot_dimension_numbers<[1], [0], [0], [1], [0, 0, 1, 1], [], []>} : vector<8x16xbf16>, vector<16x128xbf16>, vector<8x128xf32> -> vector<8x128xf32>
      %24 = arith.truncf %23 : vector<8x128xf32> to vector<8x128xbf16>
      %c0_20 = arith.constant 0 : index
      %c0_21 = arith.constant 0 : index
      %25 = vector.load %arg6[%c0_20, %c0_21] : memref<128x128xbf16, #tpu.memory_space<vmem>>, vector<128x128xbf16>
      %cst_22 = arith.constant dense<0.000000e+00> : vector<8x128xf32>
      %26 = tpu.matmul %24, %25, %cst_22 {dimension_numbers = #tpu.dot_dimension_numbers<[1], [0], [0], [1], [0, 0, 1, 1], [], []>} : vector<8x128xbf16>, vector<128x128xbf16>, vector<8x128xf32> -> vector<8x128xf32>
      %c0_23 = arith.constant 0 : index
      %c0_24 = arith.constant 0 : index
      %27 = vector.load %arg7[%c0_23, %c0_24] : memref<1x128xf32, #tpu.memory_space<vmem>>, vector<1x128xf32>
      %28 = vector.broadcast %27 : vector<1x128xf32> to vector<8x128xf32>
      %29 = arith.addf %26, %28 : vector<8x128xf32>
      %c0_25 = arith.constant 0 : index
      %c0_26 = arith.constant 0 : index
      %30 = vector.load %arg8[%c0_25, %c0_26] : memref<8x128xf32, #tpu.memory_space<vmem>>, vector<8x128xf32>
      tpu.vector_store %arg8[%c0_25, %c0_26], %29 {strides = array<i32>} : memref<8x128xf32, #tpu.memory_space<vmem>>, vector<8x128xf32>,
    } else {
    }
    return
  }
  func.func @transform_0(%arg0: i32) -> (i32, i32) {
    %c0_i32 = arith.constant 0 : i32
    %c0_i32_0 = arith.constant 0 : i32
    %c0_i32_1 = arith.constant 0 : i32
    return %c0_i32, %c0_i32_0 : i32, i32
  }
  func.func @transform_1(%arg0: i32) -> (i32, i32) {
    %c0_i32 = arith.constant 0 : i32
    %c0_i32_0 = arith.constant 0 : i32
    %c0_i32_1 = arith.constant 0 : i32
    return %c0_i32, %c0_i32_0 : i32, i32
  }
  func.func @transform_2(%arg0: i32) -> (i32, i32, i32) {
    %c0_i32 = arith.constant 0 : i32
    %c0_i32_0 = arith.constant 0 : i32
    %c0_i32_1 = arith.constant 0 : i32
    return %arg0, %c0_i32, %c0_i32_0 : i32, i32, i32
  }
  func.func @transform_3(%arg0: i32) -> (i32, i32, i32) {
    %c0_i32 = arith.constant 0 : i32
    %c0_i32_0 = arith.constant 0 : i32
    %c0_i32_1 = arith.constant 0 : i32
    return %arg0, %c0_i32, %c0_i32_0 : i32, i32, i32
  }
  func.func @transform_4(%arg0: i32) -> (i32, i32) {
    %c0_i32 = arith.constant 0 : i32
    %c0_i32_0 = arith.constant 0 : i32
    %c0_i32_1 = arith.constant 0 : i32
    return %c0_i32, %c0_i32_0 : i32, i32
  }
  func.func @transform_5(%arg0: i32) -> (i32, i32) {
    %c0_i32 = arith.constant 0 : i32
    %c0_i32_0 = arith.constant 0 : i32
    %c0_i32_1 = arith.constant 0 : i32
    return %c0_i32, %c0_i32_0 : i32, i32
  }
  func.func @transform_6(%arg0: i32) -> (i32, i32) {
    %c0_i32 = arith.constant 0 : i32
    %c0_i32_0 = arith.constant 0 : i32
    %c0_i32_1 = arith.constant 0 : i32
    return %c0_i32, %c0_i32_0 : i32, i32
  }
  func.func @transform_7(%arg0: i32) -> (i32, i32) {
    %c0_i32 = arith.constant 0 : i32
    %c0_i32_0 = arith.constant 0 : i32
    %c0_i32_1 = arith.constant 0 : i32
    return %c0_i32, %c0_i32_0 : i32, i32
  }
}

</mosaic_0001>

<bundles_post_ra>
// kernel: tpu_custom_call.1
= control target key start
LH: loop header
LB: loop body
LE: loop exit
PB: predicated region body
PF: predicated region fallthrough
CT: control target
= control target key end

     0   :  { %s1468_s0 = inlined_call_operand.hbm [shape: bf16[16,16], index: 0, kind: input, shape index: {}]   ;;  %s1469_s1 = inlined_call_operand.hbm [shape: bf16[16,128], index: 1, kind: input, shape index: {}]   ;;  %s1470_s2 = inlined_call_operand.hbm [shape: bf16[3,128,128], index: 2, kind: input, shape index: {}]   ;;  %s1471_s3 = inlined_call_operand.hbm [shape: f32[3,1,128], index: 3, kind: input, shape index: {}]   ;;  %s1472_s4 = inlined_call_operand.hbm [shape: bf16[8,16], index: 4, kind: input, shape index: {}]   ;;  %s1473_s5 = inlined_call_operand.hbm [shape: bf16[128,128], index: 5, kind: input, shape index: {}]   ;;  %s1474_s6 = inlined_call_operand.vmem [shape: f32[1,128], index: 6, kind: input, shape index: {}]   ;;  %s1475_s7 = inlined_call_operand.hbm [shape: f32[8,128], index: 7, kind: output, shape index: {}]  }
   0x1   :  { %1481 = sst [smem:[#allocation20_spill]] %s1468_s0 }
   0x2   :  { %1482 = sst [smem:[#allocation21_spill]] %s1469_s1 }
   0x3   :  { %1483 = sst [smem:[#allocation22_spill]] %s1470_s2 }
   0x4   :  { %1484 = sst [smem:[#allocation23_spill]] %s1472_s4 }
   0x5   :  { %12 = vsyncpa [#allocation4], 0 }
   0x6   :  { %13 = vsyncpa [#allocation7], 0 }
   0x7   :  { %14 = vsyncpa [#allocation12], 0 }
   0x8   :  { %15 = vsyncpa [#allocation5], 0  ;;  %s1269_s24 = smov 0   ;;  %s1271_s25 = smov 0  }
   0x9   :  { %s1273_s26 = smov 0   ;;  %s1275_s27 = smov 0  }
   0xa LB: > { %s1288_s28 = sadd.s32 4294967295, %s1220_s27   ;;  %p83_p0 = scmp.ne.s32.totalorder %s1212_s25, %s1208_s24  ;;  %s1220_s27 = sphi %s1275_s27, %s1499_s27   ;;  %s1216_s26 = sphi %s1273_s26, %s1498_s26   ;;  %s1212_s25 = sphi %s1271_s25, %s1497_s25   ;;  %s1208_s24 = sphi %s1269_s24, %s1496_s24  }
   0xb   : > { %p84_p1 = scmp.eq.s32.totalorder %s1288_s28, 0  ;;  %p738_p2 = scmp.ge.s32.totalorder %s1220_s27, 1 }
   0xc   : > { %p204_p3 = scmp.lt.s32.totalorder %s1220_s27, 4  ;;  %p739_p4 = scmp.ne.s32.totalorder %s1288_s28, 0 }
   0xd   : > { %p1297_p5 = por %p84_p1, %p83_p0  ;;  %s1486_s0 = sld [smem:[#allocation20_spill]] }
   0xe   : > { %p1304_p6 = pnand %p738_p2, %p204_p3  ;;  %s1222_s11 = smov [#allocation3]  }
   0xf   : > { %s217_s12 = sshll.u32 %s1222_s11, 4  ;;  %s1489_s1 = sld [smem:[#allocation21_spill]]  ;;  %s218_s12 = int_to_ptr.vmem [resolvable:$true] %s217_s12 }
  0x10   : > { %p886_p7 = pneg %p1304_p6  ;;  %s1476_s17 = smov 64  }
  0x11   : > { %s1479_s18 = smov 4   ;;  %s1225_s19 = smov [#allocation6]  }
  0x12   : > { %p1312_p8 = pnand %p886_p7, %p84_p1  ;;  %s231_s20 = sshll.u32 %s1225_s19, 4  ;;  %s232_s20 = int_to_ptr.vmem [resolvable:$true] %s231_s20 }
  0x13   : > { %s215_s9 = sshll.u32 %s1486_s0, 4  ;;  %s1330_s21 = sadd.s32 1, %s1220_s27   ;;  %s216_s9 = int_to_ptr.hbm [resolvable:$true] %s215_s9 }
  0x14   : > { %889 = dma.hbm_to_vmem [thread:$0]  (!%p1312_p8), %s216_s9, 128, %s218_s12, [#allocation4], %s1476_s17, %s1476_s17, %s1479_s18  }
  0x15   : > { %s229_s16 = sshll.u32 %s1489_s1, 4  ;;  %s70_s22 = sadd.s32 1, %s1216_s26  ;;  %s230_s16 = int_to_ptr.hbm [resolvable:$true] %s229_s16 }
  0x16   : > { %892 = dma.hbm_to_vmem [thread:$0]  (!%p1312_p8), %s230_s16, 128, %s232_s20, [#allocation7], %s1476_s17, %s1476_s17, %s1479_s18  }
  0x17   : > { %s67_s23 = ssub.s32 %s1220_s27, %s1330_s21  ;;  %p77_p9 = scmp.ne.s32.totalorder %s1216_s26, %s1212_s25 }
  0x18   : > { %p68_p10 = scmp.eq.s32.totalorder %s67_s23, 0  ;;  %p78_p11 = scmp.eq.s32.totalorder %s1220_s27, 0 }
  0x19   : > { %p910_p12 = scmp.lt.s32.totalorder %s1220_s27, 3  ;;  %s274_s24 = sand.u32 1, %s1220_s27  }
  0x1a   : > { %s1341_s30 = scalar_select %p68_p10, %s1216_s26, %s70_s22  }
  0x1b   : > { %p79_p13 = por %p78_p11, %p77_p9  ;;  %s1478_s8 = sand.u32 1, %s1216_s26  }
  0x1c   : > { %s837_s9 = sshll.u32 %s1220_s27, 6  ;;  %s744_s11 = sshll.u32 %s1478_s8, 6 }
  0x1d   : > { %s1490_s2 = sld [smem:[#allocation22_spill]]  ;;  %s278_s19 = scalar_lea.vmem [#allocation8], %s744_s11 }
  0x1e   : > { %s286_s20 = sshll.u32 %s278_s19, 4  ;;  %p1352_p0 = pnand %p910_p12, %p79_p13  ;;  %s287_s20 = int_to_ptr.vmem [resolvable:$true] %s286_s20 }
  0x1f   : > { %s1492_s4 = sld [smem:[#allocation23_spill]]  ;;  %s1359_s18 = scalar_lea.sflag [#allocation4], %s274_s24 }
  0x20   : > { %p1022_p3 = pneg %p1352_p0 }
  0x23   : > { %s283_s15 = scalar_lea.hbm %s1490_s2, %s837_s9  ;;  %s1025_s17 = scalar_lea.hbm %s1490_s2, 192 }
  0x24   : > { %s284_s16 = sshll.u32 %s283_s15, 4  ;;  %s285_s16 = int_to_ptr.hbm [resolvable:$true] %s284_s16 }
  0x25   : > { %s244_s8 = sshll.u32 %s1492_s4, 4  ;;  %s1018_s9 = sshra.s32 %s285_s16, 4  ;;  %s245_s8 = int_to_ptr.hbm [resolvable:$true] %s244_s8  ;;  %s1019_s9 = int_to_ptr.hbm [resolvable:$true] %s1018_s9 }
  0x26   : > { %s1020_s12 = scalar_lea.hbm %s1019_s9, 64  ;;  %p1026_p10 = scmp.lt.s32.totalorder %s1019_s9, %s1490_s2 }
  0x27   : > { %p1021_p2 = scmp.ne.s32.totalorder %s1019_s9, %s1020_s12  ;;  %p1027_p11 = scmp.lt.s32.totalorder %s1025_s17, %s1020_s12 }
  0x29   : > { %p1023_p7 = pnand %p1022_p3, %p1021_p2  ;;  %p1028_p12 = por %p1027_p11, %p1026_p10 }
  0x2b   : > { %p1024_p9 = pneg %p1023_p7 }
  0x2d   : > { %p1029_p13 = pnand %p1028_p12, %p1024_p9 }
  0x2f   : > { %1032 = shalt.err (!%p1029_p13)
}
  0x30   : > { %s1493_s24 = smov 4   ;;  %s1494_s22 = smov 64  }
  0x31   : > { %902 = dma.hbm_to_vmem [thread:$0]  (!%p1352_p0), %s285_s16, 1024, %s287_s20, %s1359_s18, %s1494_s22, %s1494_s22, %s1493_s24  }
  0x32   : > { %s1226_s11 = smov [#allocation10]   ;;  %s255_s9 = sshll.u32 %s1473_s5, 4  ;;  %s256_s9 = int_to_ptr.hbm [resolvable:$true] %s255_s9 }
  0x33   : > { %s246_s14 = sshll.u32 %s1226_s11, 4  ;;  %s1227_s12 = smov [#allocation11]   ;;  %s247_s14 = int_to_ptr.vmem [resolvable:$true] %s246_s14 }
  0x34   : > { %895 = dma.hbm_to_vmem [thread:$0]  (!%p1312_p8), %s245_s8, 64, %s247_s14, [#allocation7]  }
  0x35   : > { %s257_s17 = sshll.u32 %s1227_s12, 4  ;;  %s302_s2 = scalar_lea.hbm %s1471_s3, %s1220_s27  ;;  %s258_s17 = int_to_ptr.vmem [resolvable:$true] %s257_s17 }
  0x36   : > { %s304_s4 = sshll.u32 %s302_s2, 4  ;;  %s1495_s0 = sand.u32 1, %s1216_s26   ;;  %s305_s4 = int_to_ptr.hbm [resolvable:$true] %s304_s4 }
  0x37   : > { %898 = dma.hbm_to_vmem [thread:$0]  (!%p1312_p8), %s256_s9, 1024, %s258_s17, [#allocation12], %s1494_s22, %s1494_s22, %s1493_s24  }
  0x38   : > { %s299_s16 = scalar_lea.vmem [#allocation9], %s1495_s0  ;;  %s1108_s11 = sshra.s32 %s305_s4, 4  ;;  %s1109_s11 = int_to_ptr.hbm [resolvable:$true] %s1108_s11 }
  0x39   : > { %s306_s20 = sshll.u32 %s299_s16, 4  ;;  %s1110_s8 = scalar_lea.hbm %s1109_s11, 1  ;;  %s307_s20 = int_to_ptr.vmem [resolvable:$true] %s306_s20 }
  0x3a   : > { %p1111_p2 = scmp.ne.s32.totalorder %s1109_s11, %s1110_s8  ;;  %s1115_s27 = scalar_lea.hbm %s1471_s3, 3 }
  0x3b   : > { %p1116_p8 = scmp.lt.s32.totalorder %s1109_s11, %s1471_s3  ;;  %p1117_p10 = scmp.lt.s32.totalorder %s1115_s27, %s1110_s8 }
  0x3c   : > { %p1113_p7 = pnand %p1111_p2, %p1022_p3 }
  0x3d   : > { %p1118_p11 = por %p1117_p10, %p1116_p8 }
  0x3e   : > { %p1114_p9 = pneg %p1113_p7 }
  0x40   : > { %p1119_p12 = pnand %p1118_p11, %p1114_p9 }
  0x42   : > { %1122 = shalt.err (!%p1119_p12)
}
  0x43   : > { %905 = dma.hbm_to_vmem [thread:$0]  (!%p1352_p0), %s305_s4, 16, %s307_s20, %s1359_s18  }
  0x44   : > { %315 = sbr.rel (%p1304_p6) target bundleno = 655 (0x28f), region = 48 }
  0x49   : > { %1183 = dma.done.wait (%p84_p1), [#allocation4], 128  }
  0x4a   : > { %1185 = vsyncadd (%p84_p1), [#allocation4], 4294967168 }
  0x4b   : > { %1187 = dma.done.wait (%p84_p1), [#allocation7], 128  }
  0x4c   : > { %1189 = vsyncadd (%p84_p1), [#allocation7], 4294967168  ;;  %s327_s23 = sand.u32 1, %s1288_s28   ;;  %s329_s4 = sand.u32 1, %s1212_s25  }
  0x4d   : > { %s750_s18 = sshll.u32 %s329_s4, 6  ;;  %s328_s10 = scalar_lea.sflag [#allocation4], %s327_s23 }
  0x4e   : > { %s1418_s24 = scalar_lea.vmem [#allocation8], %s750_s18 }
  0x4f   : > { %1191 = dma.done.wait (%p1297_p5), %s328_s10, 1040  }
  0x50   : > { %1193 = vsyncadd (%p1297_p5), %s328_s10, 4294966256  ;;  %s1424_s22 = scalar_lea.vmem [#allocation9], %s329_s4 }
  0x51   : > { %1195 = dma.done.wait (%p84_p1), [#allocation7], 64  }
  0x52   : > { %1197 = vsyncadd (%p84_p1), [#allocation7], 4294967232 }
  0x53   : > { %1199 = dma.done.wait (%p84_p1), [#allocation12], 1024  }
  0x54   : > { %1201 = vsyncadd (%p84_p1), [#allocation12], 4294966272  ;;  %385 = sbr.rel (%p739_p4) target bundleno = 91 (0x5b), region = 76 }
  0x59   : > { %v386_v0 = vld [vmem:[#allocation6] sm:$0xff]  }
  0x5a   : > { %388 = vst [vmem:[#allocation2] sm:$0xff] %v386_v0  }
  0x5b PF: > { %v847_v2 = vld [vmem:[%s1418_s24 + $0x38] sm:$0xff]  ;;  %v839_v3 = vld [vmem:[#allocation3] sm:$0xff]  ;;  %vm405_vm0 = vcmask 130048   ;;  %v845_v5 = vld [vmem:[%s1418_s24 + $0x28] sm:$0xff]  ;;  %p795_p1 = scmp.ne.s32.totalorder %s1288_s28, 2 }
  0x5c   : > { %492 = vmatpush.bf16.msra.mxu1 %v847_v2  ;;  %v846_v4 = vld [vmem:[%s1418_s24 + $0x30] sm:$0xff]  ;;  %v844_v6 = vld [vmem:[%s1418_s24 + $0x20] sm:$0xff]  ;;  %v843_v7 = vld [vmem:[%s1418_s24 + $0x18] sm:$0xff] }
  0x5d   : > { %v842_v8 = vld [vmem:[%s1418_s24 + $0x10] sm:$0xff]  ;;  %v841_v9 = vld [vmem:[%s1418_s24 + $0x8] sm:$0xff]  ;;  %v840_v10 = vld [vmem:[%s1418_s24] sm:$0xff] }
  0x5e   : > { %v956_v15 = vld [vmem:[%s1424_s22] ss:$0 sm:$0xff] }
  0x60   : > { %493 = vmatpush.bf16.msra.mxu1 %v846_v4 }
  0x61   : > { %v838_v1 = vld [vmem:[#allocation2] sm:$0xff] }
  0x62   : > { %416 = vmatpush.bf16.msra.mxu0 %v838_v1 }
  0x64   : > { %494 = vmatpush.bf16.msra.mxu1 %v845_v5 }
  0x65   : > { %762 = vmatmul.msk.bf16.vlgmr.msra.gmra.mxu0 %vm405_vm0, %v839_v3 }
  0x68   : > { %495 = vmatpush.bf16.msra.mxu1 %v844_v6 }
  0x6c   : > { %496 = vmatpush.bf16.msra.mxu1 %v843_v7 }
  0x70   : > { %497 = vmatpush.bf16.msra.mxu1 %v842_v8 }
  0x74   : > { %498 = vmatpush.bf16.msra.mxu1 %v841_v9 }
  0x78   : > { %499 = vmatpush.bf16.msra.mxu1 %v840_v10 }
  0xe2   : > { %v418_v11 = vpop.f32.mrf.mxu0 }
  0xea   : > { %v420_v12 = vpop.f32.mrf.mxu0 }
  0xeb   : > { %v423_v13 = vpack.c.bf16 %v420_v12, %v418_v11 }
  0xed   : > { %500 = vmatmul.bf16.vlgmr.msra.gmra.mxu1 %v423_v13 }
 0x16a   : > { %v501_v14 = vpop.f32.mrf.mxu1 }
 0x16b   : > { %v502_v16 = vadd.f32 %v956_v15, %v501_v14 }
 0x16d   : > { %v506_v19 = vmax.f32 %v502_v16, 0.0 }
 0x172   : > { %v503_v17 = vpop.f32.mrf.mxu1 }
 0x173   : > { %v504_v18 = vadd.f32 %v956_v15, %v503_v17 }
 0x175   : > { %v507_v20 = vmax.f32 %v504_v18, 0.0  ;;  %515 = sbr.rel (%p795_p1) target bundleno = 650 (0x28a), region = 80 }
 0x177   : > { %v860_v21 = vpack.c.bf16 %v507_v20, %v506_v19 }
 0x179   : > { %861 = vst [vmem:[#allocation2] sm:$0xff] %v860_v21  }
 0x17a   : > { %v856_v23 = vld [vmem:[#allocation11 + $0x38] sm:$0xff]  ;;  %v855_v25 = vld [vmem:[#allocation11 + $0x30] sm:$0xff]  ;;  %v854_v26 = vld [vmem:[#allocation11 + $0x28] sm:$0xff] }
 0x17b   : > { %v516_v24 = vld [vmem:[#allocation10] sm:$0xf]  ;;  %610 = vmatpush.bf16.msra.mxu1 %v856_v23  ;;  %v853_v27 = vld [vmem:[#allocation11 + $0x20] sm:$0xff]  ;;  %v851_v29 = vld [vmem:[#allocation11 + $0x10] sm:$0xff] }
 0x17c   : > { %v852_v28 = vld [vmem:[#allocation11 + $0x18] sm:$0xff]  ;;  %v850_v30 = vld [vmem:[#allocation11 + $0x8] sm:$0xff]  ;;  %v849_v31 = vld [vmem:[#allocation11] sm:$0xff] }
 0x17d   : > { %v957_v35 = vld [vmem:[%s1474_s6] ss:$0 sm:$0xff] }
 0x17f   : > { %611 = vmatpush.bf16.msra.mxu1 %v855_v25 }
 0x180   : > { %v848_v22 = vld [vmem:[#allocation2] sm:$0xff] }
 0x181   : > { %535 = vmatpush.bf16.msra.mxu0 %v848_v22 }
 0x183   : > { %612 = vmatpush.bf16.msra.mxu1 %v854_v26 }
 0x184   : > { %800 = vmatmul.msk.bf16.vlgmr.msra.gmra.mxu0 %vm405_vm0, %v516_v24 }
 0x187   : > { %613 = vmatpush.bf16.msra.mxu1 %v853_v27 }
 0x18b   : > { %614 = vmatpush.bf16.msra.mxu1 %v852_v28 }
 0x18f   : > { %615 = vmatpush.bf16.msra.mxu1 %v851_v29 }
 0x193   : > { %616 = vmatpush.bf16.msra.mxu1 %v850_v30 }
 0x197   : > { %617 = vmatpush.bf16.msra.mxu1 %v849_v31 }
 0x201   : > { %v537_v32 = vpop.f32.mrf.mxu0 }
 0x202   : > { %v541_v33 = vpack.c.bf16 %v537_v32, %v537_v32 }
 0x204   : > { %618 = vmatmul.bf16.vlgmr.msra.gmra.mxu1 %v541_v33 }
 0x209   : > { %v539_v34 = vpop.f32.mrf.mxu0 }
 0x281   : > { %v619_v36 = vpop.f32.mrf.mxu1 }
 0x282   : > { %v620_v37 = vadd.f32 %v957_v35, %v619_v36 }
 0x284   : > { %623 = vst [vmem:[#allocation13] sm:$0xff] %v620_v37 }
 0x289   : > { %v621_v38 = vpop.f32.mrf.mxu1 }
 0x28a PF: > { %p915_p4 = scmp.eq.s32.totalorder %s1288_s28, 2  ;;  %s1228_s9 = smov [#allocation13]  }
 0x28b   : > { %s630_s12 = sshll.u32 %s1228_s9, 4  ;;  %s632_s0 = sshll.u32 %s1475_s7, 4  ;;  %s631_s12 = int_to_ptr.vmem [resolvable:$true] %s630_s12  ;;  %s633_s0 = int_to_ptr.hbm [resolvable:$true] %s632_s0 }
 0x28c   : > { %883 = dma.vmem_to_hbm [thread:$0]  (%p915_p4), %s631_s12, 128, %s633_s0, [#allocation5]  }
 0x28d   : > { %1203 = dma.done.wait (%p915_p4), [#allocation5], 128  }
 0x28e   : > { %1205 = vsyncadd (%p915_p4), [#allocation5], 4294967168 }
 0x28f PF: > { %p18_p5 = scmp.ge.s32.totalorder %s1330_s21, 5   ;;  %s1496_s24 = smov %s1212_s25 }
 0x290   : > { %s1497_s25 = smov %s1216_s26  ;;  %s1498_s26 = smov %s1341_s30 }
 0x291   : > { %s1499_s27 = smov %s1330_s21  ;;  %20 = sbr.rel (!%p18_p5) target bundleno = 10 (0xa), region = 119 }
 0x296   :  { %646 = vsyncpa [#allocation4], 1 }
 0x297   :  { %648 = vsyncpa [#allocation4 + $0x1], 1 }
 0x298   :  { %649 = vsyncpa [#allocation7], 1 }
 0x299   :  { %650 = vsyncpa [#allocation12], 1 }
 0x29a   :  { %651 = vsyncpa [#allocation5], 1 }
 0x29b   :  { %653 = vsyncpa [#allocation5 + $0x1], 1 }

</bundles_post_ra>
